<compile_context>
chip_gen: v6e
topology: v6e:2x2x1
jax: 0.10.0
libtpu: 0.0.40
codegen_flags: <defaults>
</compile_context>

<pallas_src>
import functools
import math
import numpy as np
import jax
import jax.numpy as jnp
from jax.experimental import pallas as pl
from jax.experimental.pallas import tpu as pltpu

LANE = 128          # vreg lane width (last-dim granularity)
ROW_TILE = 16       # bf16 sublane packing (also a multiple of the f32 8-row tile)


def _round_up(n, m):
    return ((n + m - 1) // m) * m


def _mlp_kernel(x_ref, w1_ref, b1_ref, w2_ref, b2_ref, w3_ref, b3_ref,
                w4_ref, b4_ref, o_ref):
    # bf16 MXU matmuls with f32 accumulation; bias add + ReLU in f32.
    x = x_ref[...].astype(jnp.bfloat16)
    h = jnp.dot(x, w1_ref[...], preferred_element_type=jnp.float32) + b1_ref[...]
    h = jnp.maximum(h, 0.0)
    h = jnp.dot(h.astype(jnp.bfloat16), w2_ref[...],
                preferred_element_type=jnp.float32) + b2_ref[...]
    h = jnp.maximum(h, 0.0)
    h = jnp.dot(h.astype(jnp.bfloat16), w3_ref[...],
                preferred_element_type=jnp.float32) + b3_ref[...]
    h = jnp.maximum(h, 0.0)
    h = jnp.dot(h.astype(jnp.bfloat16), w4_ref[...],
                preferred_element_type=jnp.float32) + b4_ref[...]
    o_ref[...] = h.astype(o_ref.dtype)


def mlp_forward(x, params, out_dim, batch_tile=1024):
    """x: (batch, in_dim) f32 (unpadded). params: bf16 weights (in,out) + f32 biases."""
    (w1, b1), (w2, b2), (w3, b3), (w4, b4) = params
    batch, in_dim = x.shape
    h_p = w1.shape[1]
    out_p = w4.shape[1]

    # Batch tile: multiple of 16 rows; >= 2 grid steps when there is enough
    # work to split (v7x megacore), capped at batch_tile rows per step.
    tb = min(_round_up(batch_tile, ROW_TILE),
             _round_up(pl.cdiv(batch, 2), ROW_TILE))
    grid = (pl.cdiv(batch, tb),)

    # VMEM budget: double-buffered x/out tiles + resident (double-buffered)
    # weights + headroom for the f32 intermediates; clamp to [32 MiB, 64 MiB]
    # (v7x physical VMEM per TensorCore is 64 MiB).
    resident_bytes = sum(int(w.size) * w.dtype.itemsize +
                         int(b.size) * b.dtype.itemsize for (w, b) in params)
    tile_bytes = (2 * tb * in_dim * 4          # x blocks (f32)
                  + 2 * tb * out_p * 4         # out blocks (f32)
                  + 2 * resident_bytes         # weights/biases
                  + 4 * tb * h_p * 4)          # intermediate activations headroom
    vmem_limit = int(min(max(2 * tile_bytes, 32 * 1024 * 1024), 64 * 1024 * 1024))

    flops = 2 * batch * (in_dim * h_p + 2 * h_p * h_p + h_p * out_p)
    bytes_accessed = (batch * in_dim * 4 + batch * out_p * 4 + resident_bytes)
    cost = pl.CostEstimate(flops=flops, transcendentals=0,
                           bytes_accessed=bytes_accessed)

    def resident(arr):  # same block every grid step -> DMA'd once, stays in VMEM
        return pl.BlockSpec(arr.shape, lambda i: (0, 0))

    out = pl.pallas_call(
        _mlp_kernel,
        out_shape=jax.ShapeDtypeStruct((batch, out_p), jnp.float32),
        grid=grid,
        in_specs=[
            # x tiled over batch; last dim == full array dim (lane rule OK).
            pl.BlockSpec((tb, in_dim), lambda i: (i, 0)),
            resident(w1), resident(b1),
            resident(w2), resident(b2),
            resident(w3), resident(b3),
            resident(w4), resident(b4),
        ],
        out_specs=pl.BlockSpec((tb, out_p), lambda i: (i, 0)),
        compiler_params=pltpu.CompilerParams(
            dimension_semantics=("parallel",),   # megacore sharding on v7x
            vmem_limit_bytes=vmem_limit,
        ),
        cost_estimate=cost,
    )(x, w1, b1, w2, b2, w3, b3, w4, b4)

    return out[:, :out_dim]


class Net:
    """JAX/Pallas port of the PyTorch Net (MLP policy head)."""

    def __init__(self, state_shape, action_shape, key):
        in_dim = int(np.prod(state_shape))
        out_dim = int(np.prod(action_shape))
        layer_dim = int(pow(2, math.floor(math.log2(max(in_dim, out_dim)))))
        self.in_dim, self.out_dim, self.layer_dim = in_dim, out_dim, layer_dim

        h_p = _round_up(layer_dim, LANE)
        out_p = _round_up(out_dim, LANE)

        # (fan_in, fan_out, padded_in, padded_out); layer 1 keeps K unpadded.
        dims = [(in_dim, layer_dim, in_dim, h_p),
                (layer_dim, layer_dim, h_p, h_p),
                (layer_dim, layer_dim, h_p, h_p),
                (layer_dim, out_dim, h_p, out_p)]

        params = []
        for (fan_in, fan_out, fi_p, fo_p) in dims:
            key, kw, kb = jax.random.split(key, 3)
            bound = 1.0 / math.sqrt(fan_in)   # PyTorch nn.Linear default init
            w = jax.random.uniform(kw, (fan_in, fan_out), jnp.float32, -bound, bound)
            b = jax.random.uniform(kb, (fan_out,), jnp.float32, -bound, bound)
            w_pad = jnp.zeros((fi_p, fo_p), jnp.float32).at[:fan_in, :fan_out].set(w)
            b_pad = jnp.zeros((1, fo_p), jnp.float32).at[0, :fan_out].set(b)
            params.append((w_pad.astype(jnp.bfloat16), b_pad))
        self.params = params

        # One jitted executable per batch shape: reshape + kernel + logits slice.
        self._forward = jax.jit(functools.partial(self._fwd, out_dim=out_dim))

    @staticmethod
    def _fwd(obs, params, *, out_dim):
        x = obs.reshape(obs.shape[0], -1).astype(jnp.float32)   # obs.view(batch, -1)
        return mlp_forward(x, params, out_dim)

    def __call__(self, obs, state=None, info={}):
        obs = jnp.asarray(obs, dtype=jnp.float32)
        logits = self._forward(obs, self.params)
        return logits, state


def _reference_forward(x, params, out_dim):
    """Pure-JAX reference with the same bf16-matmul / f32-accumulate recipe."""
    h = x.astype(jnp.bfloat16)
    for i, (w, b) in enumerate(params):
        h = jnp.dot(h, w, preferred_element_type=jnp.float32) + b
        if i < len(params) - 1:
            h = jnp.maximum(h, 0.0).astype(jnp.bfloat16)
    return h[:, :out_dim]


if __name__ == "__main__":
    key = jax.random.PRNGKey(0)
    k_obs, k_net, k_big = jax.random.split(key, 3)

    state_shape = (4, 8)   # prod = 32  -> layer_dim = 32 (hidden padded to 128)
    action_shape = (8,)    # prod = 8   (padded to 128, sliced back)
    batch = 2

    net = Net(state_shape, action_shape, k_net)

    obs = jax.random.normal(k_obs, (batch,) + state_shape, dtype=jnp.float32)
    logits, st = net(obs)
    logits = jax.block_until_ready(logits)

    ref = _reference_forward(obs.reshape(batch, -1), net.params, net.out_dim)
    assert logits.shape == (batch, int(np.prod(action_shape)))
    assert st is None
    np.testing.assert_allclose(np.asarray(logits), np.asarray(ref),
                               rtol=1e-3, atol=1e-3)

    # Larger, non-multiple batch: >= 2 grid steps + masked partial last block.
    big_batch = 300
    obs_big = jax.random.normal(k_big, (big_batch,) + state_shape, dtype=jnp.float32)
    logits_big, _ = net(obs_big)
    logits_big = jax.block_until_ready(logits_big)
    ref_big = _reference_forward(obs_big.reshape(big_batch, -1), net.params, net.out_dim)
    assert logits_big.shape == (big_batch, net.out_dim)
    np.testing.assert_allclose(np.asarray(logits_big), np.asarray(ref_big),
                               rtol=1e-3, atol=1e-3)

    # Small-tile path (many grid steps) to exercise batch-boundary masking.
    fwd_tiles = jax.jit(functools.partial(mlp_forward, out_dim=net.out_dim,
                                          batch_tile=64))
    out_tiles = jax.block_until_ready(
        fwd_tiles(obs_big.reshape(big_batch, -1), net.params))
    np.testing.assert_allclose(np.asarray(out_tiles), np.asarray(ref_big),
                               rtol=1e-3, atol=1e-3)

    print("KERNEL_OK")
</pallas_src>

<mosaic_0001>
module attributes {stable_mosaic.version = 11 : i64} {
  func.func @_mlp_kernel(%arg0: i32, %arg1: memref<16x32xf32, #tpu.memory_space<vmem>>, %arg2: memref<32x128xbf16, #tpu.memory_space<vmem>>, %arg3: memref<1x128xf32, #tpu.memory_space<vmem>>, %arg4: memref<128x128xbf16, #tpu.memory_space<vmem>>, %arg5: memref<1x128xf32, #tpu.memory_space<vmem>>, %arg6: memref<128x128xbf16, #tpu.memory_space<vmem>>, %arg7: memref<1x128xf32, #tpu.memory_space<vmem>>, %arg8: memref<128x128xbf16, #tpu.memory_space<vmem>>, %arg9: memref<1x128xf32, #tpu.memory_space<vmem>>, %arg10: memref<16x128xf32, #tpu.memory_space<vmem>>) attributes {dimension_semantics = [#tpu.dimension_semantics<parallel>], iteration_bounds = array<i64: 1>, scalar_prefetch = 0 : i64, scratch_operands = 0 : i64, tpu.core_type = #tpu.core_type<tc>, window_params = [{transform_indices = @transform_0, window_bounds = array<i64: 16, 32>}, {pipeline_mode = #tpu.pipeline_mode<synchronous>, transform_indices = @transform_1, window_bounds = array<i64: 32, 128>}, {pipeline_mode = #tpu.pipeline_mode<synchronous>, transform_indices = @transform_2, window_bounds = array<i64: 1, 128>}, {pipeline_mode = #tpu.pipeline_mode<synchronous>, transform_indices = @transform_3, window_bounds = array<i64: 128, 128>}, {pipeline_mode = #tpu.pipeline_mode<synchronous>, transform_indices = @transform_4, window_bounds = array<i64: 1, 128>}, {pipeline_mode = #tpu.pipeline_mode<synchronous>, transform_indices = @transform_5, window_bounds = array<i64: 128, 128>}, {pipeline_mode = #tpu.pipeline_mode<synchronous>, transform_indices = @transform_6, window_bounds = array<i64: 1, 128>}, {pipeline_mode = #tpu.pipeline_mode<synchronous>, transform_indices = @transform_7, window_bounds = array<i64: 128, 128>}, {pipeline_mode = #tpu.pipeline_mode<synchronous>, transform_indices = @transform_8, window_bounds = array<i64: 1, 128>}, {transform_indices = @transform_9, window_bounds = array<i64: 16, 128>}]} {
    %c0 = arith.constant 0 : index
    %c0_0 = arith.constant 0 : index
    %0 = vector.load %arg1[%c0, %c0_0] : memref<16x32xf32, #tpu.memory_space<vmem>>, vector<16x32xf32>
    %1 = arith.truncf %0 : vector<16x32xf32> to vector<16x32xbf16>
    %c0_1 = arith.constant 0 : index
    %c0_2 = arith.constant 0 : index
    %2 = vector.load %arg2[%c0_1, %c0_2] : memref<32x128xbf16, #tpu.memory_space<vmem>>, vector<32x128xbf16>
    %cst = arith.constant dense<0.000000e+00> : vector<16x128xf32>
    %3 = tpu.matmul %1, %2, %cst {dimension_numbers = #tpu.dot_dimension_numbers<[1], [0], [0], [1], [0, 0, 1, 1], [], []>} : vector<16x32xbf16>, vector<32x128xbf16>, vector<16x128xf32> -> vector<16x128xf32>
    %c0_3 = arith.constant 0 : index
    %c0_4 = arith.constant 0 : index
    %4 = vector.load %arg3[%c0_3, %c0_4] : memref<1x128xf32, #tpu.memory_space<vmem>>, vector<1x128xf32>
    %5 = vector.broadcast %4 : vector<1x128xf32> to vector<16x128xf32>
    %6 = arith.addf %3, %5 : vector<16x128xf32>
    %cst_5 = arith.constant 0.000000e+00 : f32
    %7 = vector.broadcast %cst_5 : f32 to vector<16x128xf32>
    %8 = arith.maximumf %6, %7 : vector<16x128xf32>
    %9 = arith.truncf %8 : vector<16x128xf32> to vector<16x128xbf16>
    %c0_6 = arith.constant 0 : index
    %c0_7 = arith.constant 0 : index
    %10 = vector.load %arg4[%c0_6, %c0_7] : memref<128x128xbf16, #tpu.memory_space<vmem>>, vector<128x128xbf16>
    %cst_8 = arith.constant dense<0.000000e+00> : vector<16x128xf32>
    %11 = tpu.matmul %9, %10, %cst_8 {dimension_numbers = #tpu.dot_dimension_numbers<[1], [0], [0], [1], [0, 0, 1, 1], [], []>} : vector<16x128xbf16>, vector<128x128xbf16>, vector<16x128xf32> -> vector<16x128xf32>
    %c0_9 = arith.constant 0 : index
    %c0_10 = arith.constant 0 : index
    %12 = vector.load %arg5[%c0_9, %c0_10] : memref<1x128xf32, #tpu.memory_space<vmem>>, vector<1x128xf32>
    %13 = vector.broadcast %12 : vector<1x128xf32> to vector<16x128xf32>
    %14 = arith.addf %11, %13 : vector<16x128xf32>
    %cst_11 = arith.constant 0.000000e+00 : f32
    %15 = vector.broadcast %cst_11 : f32 to vector<16x128xf32>
    %16 = arith.maximumf %14, %15 : vector<16x128xf32>
    %17 = arith.truncf %16 : vector<16x128xf32> to vector<16x128xbf16>
    %c0_12 = arith.constant 0 : index
    %c0_13 = arith.constant 0 : index
    %18 = vector.load %arg6[%c0_12, %c0_13] : memref<128x128xbf16, #tpu.memory_space<vmem>>, vector<128x128xbf16>
    %cst_14 = arith.constant dense<0.000000e+00> : vector<16x128xf32>
    %19 = tpu.matmul %17, %18, %cst_14 {dimension_numbers = #tpu.dot_dimension_numbers<[1], [0], [0], [1], [0, 0, 1, 1], [], []>} : vector<16x128xbf16>, vector<128x128xbf16>, vector<16x128xf32> -> vector<16x128xf32>
    %c0_15 = arith.constant 0 : index
    %c0_16 = arith.constant 0 : index
    %20 = vector.load %arg7[%c0_15, %c0_16] : memref<1x128xf32, #tpu.memory_space<vmem>>, vector<1x128xf32>
    %21 = vector.broadcast %20 : vector<1x128xf32> to vector<16x128xf32>
    %22 = arith.addf %19, %21 : vector<16x128xf32>
    %cst_17 = arith.constant 0.000000e+00 : f32
    %23 = vector.broadcast %cst_17 : f32 to vector<16x128xf32>
    %24 = arith.maximumf %22, %23 : vector<16x128xf32>
    %25 = arith.truncf %24 : vector<16x128xf32> to vector<16x128xbf16>
    %c0_18 = arith.constant 0 : index
    %c0_19 = arith.constant 0 : index
    %26 = vector.load %arg8[%c0_18, %c0_19] : memref<128x128xbf16, #tpu.memory_space<vmem>>, vector<128x128xbf16>
    %cst_20 = arith.constant dense<0.000000e+00> : vector<16x128xf32>
    %27 = tpu.matmul %25, %26, %cst_20 {dimension_numbers = #tpu.dot_dimension_numbers<[1], [0], [0], [1], [0, 0, 1, 1], [], []>} : vector<16x128xbf16>, vector<128x128xbf16>, vector<16x128xf32> -> vector<16x128xf32>
    %c0_21 = arith.constant 0 : index
    %c0_22 = arith.constant 0 : index
    %28 = vector.load %arg9[%c0_21, %c0_22] : memref<1x128xf32, #tpu.memory_space<vmem>>, vector<1x128xf32>
    %29 = vector.broadcast %28 : vector<1x128xf32> to vector<16x128xf32>
    %30 = arith.addf %27, %29 : vector<16x128xf32>
    %c0_23 = arith.constant 0 : index
    %c0_24 = arith.constant 0 : index
    %31 = vector.load %arg10[%c0_23, %c0_24] : memref<16x128xf32, #tpu.memory_space<vmem>>, vector<16x128xf32>
    tpu.vector_store %arg10[%c0_23, %c0_24], %30 {strides = array<i32>} : memref<16x128xf32, #tpu.memory_space<vmem>>, vector<16x128xf32>,
    return
  }
  func.func @transform_0(%arg0: i32) -> (i32, i32) {
    %c0_i32 = arith.constant 0 : i32
    %c0_i32_0 = arith.constant 0 : i32
    return %arg0, %c0_i32 : i32, i32
  }
  func.func @transform_1(%arg0: i32) -> (i32, i32) {
    %c0_i32 = arith.constant 0 : i32
    %c0_i32_0 = arith.constant 0 : i32
    %c0_i32_1 = arith.constant 0 : i32
    return %c0_i32, %c0_i32_0 : i32, i32
  }
  func.func @transform_2(%arg0: i32) -> (i32, i32) {
    %c0_i32 = arith.constant 0 : i32
    %c0_i32_0 = arith.constant 0 : i32
    %c0_i32_1 = arith.constant 0 : i32
    return %c0_i32, %c0_i32_0 : i32, i32
  }
  func.func @transform_3(%arg0: i32) -> (i32, i32) {
    %c0_i32 = arith.constant 0 : i32
    %c0_i32_0 = arith.constant 0 : i32
    %c0_i32_1 = arith.constant 0 : i32
    return %c0_i32, %c0_i32_0 : i32, i32
  }
  func.func @transform_4(%arg0: i32) -> (i32, i32) {
    %c0_i32 = arith.constant 0 : i32
    %c0_i32_0 = arith.constant 0 : i32
    %c0_i32_1 = arith.constant 0 : i32
    return %c0_i32, %c0_i32_0 : i32, i32
  }
  func.func @transform_5(%arg0: i32) -> (i32, i32) {
    %c0_i32 = arith.constant 0 : i32
    %c0_i32_0 = arith.constant 0 : i32
    %c0_i32_1 = arith.constant 0 : i32
    return %c0_i32, %c0_i32_0 : i32, i32
  }
  func.func @transform_6(%arg0: i32) -> (i32, i32) {
    %c0_i32 = arith.constant 0 : i32
    %c0_i32_0 = arith.constant 0 : i32
    %c0_i32_1 = arith.constant 0 : i32
    return %c0_i32, %c0_i32_0 : i32, i32
  }
  func.func @transform_7(%arg0: i32) -> (i32, i32) {
    %c0_i32 = arith.constant 0 : i32
    %c0_i32_0 = arith.constant 0 : i32
    %c0_i32_1 = arith.constant 0 : i32
    return %c0_i32, %c0_i32_0 : i32, i32
  }
  func.func @transform_8(%arg0: i32) -> (i32, i32) {
    %c0_i32 = arith.constant 0 : i32
    %c0_i32_0 = arith.constant 0 : i32
    %c0_i32_1 = arith.constant 0 : i32
    return %c0_i32, %c0_i32_0 : i32, i32
  }
  func.func @transform_9(%arg0: i32) -> (i32, i32) {
    %c0_i32 = arith.constant 0 : i32
    %c0_i32_0 = arith.constant 0 : i32
    return %arg0, %c0_i32 : i32, i32
  }
}

</mosaic_0001>

<bundles_post_ra>
// kernel: _fwd.1
= control target key start
LH: loop header
LB: loop body
LE: loop exit
PB: predicated region body
PF: predicated region fallthrough
CT: control target
= control target key end

     0   :  { %14 = vsyncpa [#allocation3], 0  ;;  %s940_s0 = inlined_call_operand.vmem [shape: f32[2,32], index: 0, kind: input, shape index: {}]   ;;  %s941_s1 = inlined_call_operand.hbm [shape: bf16[32,128], index: 1, kind: input, shape index: {}]   ;;  %s942_s2 = inlined_call_operand.vmem [shape: f32[1,128], index: 2, kind: input, shape index: {}]   ;;  %s943_s3 = inlined_call_operand.hbm [shape: bf16[128,128], index: 3, kind: input, shape index: {}]   ;;  %s944_s4 = inlined_call_operand.vmem [shape: f32[1,128], index: 4, kind: input, shape index: {}]   ;;  %s945_s5 = inlined_call_operand.hbm [shape: bf16[128,128], index: 5, kind: input, shape index: {}]   ;;  %s946_s6 = inlined_call_operand.vmem [shape: f32[1,128], index: 6, kind: input, shape index: {}]   ;;  %s947_s7 = inlined_call_operand.hbm [shape: bf16[128,128], index: 7, kind: input, shape index: {}]   ;;  %s948_s8 = inlined_call_operand.vmem [shape: f32[1,128], index: 8, kind: input, shape index: {}]   ;;  %s949_s9 = inlined_call_operand.hbm [shape: f32[2,128], index: 9, kind: output, shape index: {}]  }
   0x1   :  { %15 = vsyncpa [#allocation6], 0 }
   0x2   :  { %16 = vsyncpa [#allocation9], 0 }
   0x3   :  { %17 = vsyncpa [#allocation4], 0  ;;  %s800_s30 = smov [#allocation5]   ;;  %s801_s11 = smov [#allocation2]  }
   0x4   :  { %s39_s10 = sshll.u32 %s800_s30, 4  ;;  %s25_s12 = sshll.u32 %s801_s11, 4  ;;  %s40_s10 = int_to_ptr.vmem [resolvable:$true] %s39_s10  ;;  %s26_s12 = int_to_ptr.vmem [resolvable:$true] %s25_s12 }
   0x5   :  { %s700_s13 = scalar_lea.vmem %s40_s10, 1024  ;;  %p705_p1 = scmp.lt.s32.totalorder %s40_s10, %s40_s10 }
   0x6   :  { %p701_p0 = scmp.ne.s32.totalorder %s40_s10, %s700_s13  ;;  %p706_p2 = scmp.lt.s32.totalorder %s700_s13, %s700_s13 }
   0x8   :  { %p707_p3 = por %p706_p2, %p705_p1 }
   0xa   :  { %p708_p4 = pnand %p707_p3, %p701_p0 }
   0xc   :  { %711 = shalt.err (!%p708_p4)
}
   0xd   :  { %s802_s14 = smov 64   ;;  %s803_s15 = smov 4  }
   0xe   :  { %45 = dma.hbm_to_vmem [thread:$0]  %s943_s3, 1024, %s40_s10, [#allocation6], %s802_s14, %s802_s14, %s803_s15  }
   0xf   :  { %s720_s18 = scalar_lea.vmem %s26_s12, 256  ;;  %p725_p6 = scmp.lt.s32.totalorder %s26_s12, %s26_s12 }
  0x10   :  { %p721_p5 = scmp.ne.s32.totalorder %s26_s12, %s720_s18  ;;  %p726_p7 = scmp.lt.s32.totalorder %s720_s18, %s720_s18 }
  0x12   :  { %p727_p8 = por %p726_p7, %p725_p6 }
  0x14   :  { %p728_p9 = pnand %p727_p8, %p721_p5 }
  0x16   :  { %731 = shalt.err (!%p728_p9)
}
  0x17   :  { %31 = dma.hbm_to_vmem [thread:$0]  %s941_s1, 256, %s26_s12, [#allocation3], %s802_s14, %s802_s14, %s803_s15  }
  0x18   :  { %s804_s21 = smov [#allocation7]   ;;  %s805_s23 = smov [#allocation8]  }
  0x19   :  { %s53_s22 = sshll.u32 %s804_s21, 4  ;;  %s67_s24 = sshll.u32 %s805_s23, 4  ;;  %s54_s22 = int_to_ptr.vmem [resolvable:$true] %s53_s22  ;;  %s68_s24 = int_to_ptr.vmem [resolvable:$true] %s67_s24 }
  0x1a   :  { %s740_s3 = scalar_lea.vmem %s54_s22, 1024  ;;  %p745_p11 = scmp.lt.s32.totalorder %s54_s22, %s54_s22 }
  0x1b   :  { %p741_p10 = scmp.ne.s32.totalorder %s54_s22, %s740_s3  ;;  %p746_p12 = scmp.lt.s32.totalorder %s740_s3, %s740_s3 }
  0x1d   :  { %p747_p13 = por %p746_p12, %p745_p11 }
  0x1f   :  { %p748_p0 = pnand %p747_p13, %p741_p10 }
  0x21   :  { %751 = shalt.err (!%p748_p0)
}
  0x22   :  { %59 = dma.hbm_to_vmem [thread:$0]  %s945_s5, 1024, %s54_s22, [#allocation6], %s802_s14, %s802_s14, %s803_s15  }
  0x23   :  { %s760_s1 = scalar_lea.vmem %s68_s24, 1024  ;;  %p765_p2 = scmp.lt.s32.totalorder %s68_s24, %s68_s24 }
  0x24   :  { %p761_p1 = scmp.ne.s32.totalorder %s68_s24, %s760_s1  ;;  %p766_p3 = scmp.lt.s32.totalorder %s760_s1, %s760_s1 }
  0x26   :  { %p767_p4 = por %p766_p3, %p765_p2 }
  0x28   :  { %p768_p5 = pnand %p767_p4, %p761_p1 }
  0x2a   :  { %771 = shalt.err (!%p768_p5)
}
  0x2b   :  { %73 = dma.hbm_to_vmem [thread:$0]  %s947_s7, 1024, %s68_s24, [#allocation9], %s802_s14, %s802_s14, %s803_s15  }
  0x2c   :  { %792 = dma.done.wait [#allocation3], 256  }
  0x2d   :  { %793 = vsyncadd [#allocation3], 4294967040 }
  0x2e   :  { %794 = dma.done.wait [#allocation6], 2048  }
  0x2f   :  { %795 = vsyncadd [#allocation6], 4294965248 }
  0x30   :  { %796 = dma.done.wait [#allocation9], 1024  }
  0x31   :  { %797 = vsyncadd [#allocation9], 4294966272  ;;  %v806_v0 = vmov 0.0   ;;  %vm807_vm0 = vmmov 0   ;;  %v666_v1 = vld [vmem:[#allocation2 + $0x8] sm:$0xff]   ;;  %v667_v2 = vld [vmem:[#allocation2] sm:$0xff]  }
  0x32   :  { %587 = vmatprep.subr.bf16.mxu0 %v806_v0  ;;  %591 = vmatprep.mubr.msk.bf16.mxu0 %vm807_vm0, %v806_v0  ;;  %v89_v3 = vld [vmem:[%s940_s0] sm:$0xff]  ;;  %v90_v4 = vld [vmem:[%s940_s0 + $0x8] sm:$0xff]  ;;  %vm115_vm1 = vcmask 261120   ;;  %v670_v8 = vld [vmem:[#allocation5 + $0x28] sm:$0xff]  }
  0x33   :  { %595 = vmatprep.subr.bf16.mxu1 %v806_v0  ;;  %611 = vmatprep.mubr.msk.bf16.mxu1 %vm807_vm0, %v806_v0  ;;  %v668_v5 = vld [vmem:[#allocation5 + $0x38] sm:$0xff]   ;;  %v91_v6 = vpack.c.bf16 %v90_v4, %v89_v3  ;;  %v669_v7 = vld [vmem:[#allocation5 + $0x30] sm:$0xff]   ;;  %v671_v9 = vld [vmem:[#allocation5 + $0x20] sm:$0xff]  }
  0x34   :  { %588 = vmatpush3.bf16.msra.mxu0 %v666_v1  ;;  %596 = vmatpush3.bf16.msra.mxu1 %v668_v5  ;;  %v672_v10 = vld [vmem:[#allocation5 + $0x18] sm:$0xff]   ;;  %v673_v11 = vld [vmem:[#allocation5 + $0x10] sm:$0xff]   ;;  %v674_v12 = vld [vmem:[#allocation5 + $0x8] sm:$0xff]  }
  0x35   :  { %589 = vmatprep.subr.bf16.mxu0 %v806_v0  ;;  %597 = vmatprep.subr.bf16.mxu1 %v806_v0  ;;  %v675_v13 = vld [vmem:[#allocation5] sm:$0xff]   ;;  %v676_v14 = vld [vmem:[#allocation7 + $0x38] sm:$0xff]   ;;  %v677_v15 = vld [vmem:[#allocation7 + $0x30] sm:$0xff]  }
  0x36   :  { %v678_v16 = vld [vmem:[#allocation7 + $0x28] sm:$0xff]   ;;  %v679_v17 = vld [vmem:[#allocation7 + $0x20] sm:$0xff]   ;;  %v680_v18 = vld [vmem:[#allocation7 + $0x18] sm:$0xff]  }
  0x37   :  { %v526_v19 = vld [vmem:[%s942_s2] ss:$0 sm:$0xff]  ;;  %v682_v30 = vld [vmem:[#allocation7 + $0x8] sm:$0xff]   ;;  %v683_v31 = vld [vmem:[#allocation7] sm:$0xff]  }
  0x38   :  { %590 = vmatpush3.bf16.msra.mxu0 %v667_v2  ;;  %598 = vmatpush3.bf16.msra.mxu1 %v669_v7  ;;  %v681_v29 = vld [vmem:[#allocation7 + $0x10] sm:$0xff]   ;;  %v684_v32 = vld [vmem:[#allocation8 + $0x38] sm:$0xff]   ;;  %v686_v34 = vld [vmem:[#allocation8 + $0x28] sm:$0xff]  }
  0x39   :  { %615 = vmatprep.subr.bf16.mxu0 %v806_v0  ;;  %599 = vmatprep.subr.bf16.mxu1 %v806_v0  ;;  %v685_v33 = vld [vmem:[#allocation8 + $0x30] sm:$0xff]   ;;  %v687_v35 = vld [vmem:[#allocation8 + $0x20] sm:$0xff]   ;;  %v688_v36 = vld [vmem:[#allocation8 + $0x18] sm:$0xff]  }
  0x3a   :  { %v530_v37 = vld [vmem:[%s944_s4] ss:$0 sm:$0xff]  ;;  %v690_v48 = vld [vmem:[#allocation8 + $0x8] sm:$0xff]   ;;  %v691_v49 = vld [vmem:[#allocation8] sm:$0xff]  }
  0x3b   :  { %592 = vmatmul.mubr.msk.bf16.vlgmr.msra.gmra.mxu0 %vm115_vm1, %v91_v6  ;;  %v689_v47 = vld [vmem:[#allocation8 + $0x10] sm:$0xff]  }
  0x3c   :  { %631 = vmatprep.mubr.msk.bf16.mxu0 %vm807_vm0, %v806_v0  ;;  %600 = vmatpush3.bf16.msra.mxu1 %v670_v8  ;;  %v539_v50 = vld [vmem:[%s946_s6] ss:$0 sm:$0xff] }
  0x3d   :  { %601 = vmatprep.subr.bf16.mxu1 %v806_v0  ;;  %616 = vmatpush3.bf16.msra.mxu0 %v676_v14  ;;  %v548_v60 = vld [vmem:[%s948_s8] ss:$0 sm:$0xff] }
  0x3e   :  { %617 = vmatprep.subr.bf16.mxu0 %v806_v0 }
  0x40   :  { %602 = vmatpush3.bf16.msra.mxu1 %v671_v9 }
  0x41   :  { %603 = vmatprep.subr.bf16.mxu1 %v806_v0  ;;  %618 = vmatpush3.bf16.msra.mxu0 %v677_v15 }
  0x42   :  { %619 = vmatprep.subr.bf16.mxu0 %v806_v0 }
  0x44   :  { %604 = vmatpush3.bf16.msra.mxu1 %v672_v10 }
  0x45   :  { %605 = vmatprep.subr.bf16.mxu1 %v806_v0  ;;  %620 = vmatpush3.bf16.msra.mxu0 %v678_v16 }
  0x46   :  { %621 = vmatprep.subr.bf16.mxu0 %v806_v0 }
  0x48   :  { %606 = vmatpush3.bf16.msra.mxu1 %v673_v11 }
  0x49   :  { %607 = vmatprep.subr.bf16.mxu1 %v806_v0  ;;  %622 = vmatpush3.bf16.msra.mxu0 %v679_v17 }
  0x4a   :  { %623 = vmatprep.subr.bf16.mxu0 %v806_v0 }
  0x4c   :  { %608 = vmatpush3.bf16.msra.mxu1 %v674_v12 }
  0x4d   :  { %609 = vmatprep.subr.bf16.mxu1 %v806_v0  ;;  %624 = vmatpush3.bf16.msra.mxu0 %v680_v18 }
  0x4e   :  { %625 = vmatprep.subr.bf16.mxu0 %v806_v0 }
  0x50   :  { %610 = vmatpush3.bf16.msra.mxu1 %v675_v13 }
  0x51   :  { %635 = vmatprep.subr.bf16.mxu1 %v806_v0  ;;  %626 = vmatpush3.bf16.msra.mxu0 %v681_v29 }
  0x52   :  { %627 = vmatprep.subr.bf16.mxu0 %v806_v0 }
  0x55   :  { %628 = vmatpush3.bf16.msra.mxu0 %v682_v30 }
  0x56   :  { %629 = vmatprep.subr.bf16.mxu0 %v806_v0 }
  0x59   :  { %630 = vmatpush3.bf16.msra.mxu0 %v683_v31 }
  0xfb   :  { %v153_v20 = vpop.f32.mrf.mxu0 }
  0xfc   :  { %v154_v22 = vadd.f32 %v526_v19, %v153_v20 }
  0xfd   :  { %v593_v21 = vpop.f32.mrf.mxu0 }
  0xfe   :  { %v160_v26 = vmax.f32 %v154_v22, 0.0 }
  0xff   :  { %v156_v23 = vpop.f32.mrf.mxu0 }
 0x100   :  { %v157_v24 = vadd.f32 %v526_v19, %v156_v23 }
 0x101   :  { %v594_v25 = vpop.f32.mrf.mxu0 }
 0x102   :  { %v161_v27 = vmax.f32 %v157_v24, 0.0 }
 0x104   :  { %v162_v28 = vpack.c.bf16 %v161_v27, %v160_v26 }
 0x106   :  { %612 = vmatmul.mubr.bf16.vlgmr.msra.gmra.mxu1 %v162_v28 }
 0x107   :  { %651 = vmatprep.mubr.msk.bf16.mxu1 %vm807_vm0, %v806_v0  ;;  %636 = vmatpush3.bf16.msra.mxu1 %v684_v32 }
 0x108   :  { %637 = vmatprep.subr.bf16.mxu1 %v806_v0 }
 0x10b   :  { %638 = vmatpush3.bf16.msra.mxu1 %v685_v33 }
 0x10c   :  { %639 = vmatprep.subr.bf16.mxu1 %v806_v0 }
 0x10f   :  { %640 = vmatpush3.bf16.msra.mxu1 %v686_v34 }
 0x110   :  { %641 = vmatprep.subr.bf16.mxu1 %v806_v0 }
 0x113   :  { %642 = vmatpush3.bf16.msra.mxu1 %v687_v35 }
 0x114   :  { %643 = vmatprep.subr.bf16.mxu1 %v806_v0 }
 0x117   :  { %644 = vmatpush3.bf16.msra.mxu1 %v688_v36 }
 0x118   :  { %645 = vmatprep.subr.bf16.mxu1 %v806_v0 }
 0x11b   :  { %646 = vmatpush3.bf16.msra.mxu1 %v689_v47 }
 0x11c   :  { %647 = vmatprep.subr.bf16.mxu1 %v806_v0 }
 0x11f   :  { %648 = vmatpush3.bf16.msra.mxu1 %v690_v48 }
 0x120   :  { %649 = vmatprep.subr.bf16.mxu1 %v806_v0 }
 0x123   :  { %650 = vmatpush3.bf16.msra.mxu1 %v691_v49 }
 0x1c6   :  { %v268_v38 = vpop.f32.mrf.mxu1 }
 0x1c7   :  { %v269_v40 = vadd.f32 %v530_v37, %v268_v38 }
 0x1c8   :  { %v613_v39 = vpop.f32.mrf.mxu1 }
 0x1c9   :  { %v275_v44 = vmax.f32 %v269_v40, 0.0 }
 0x1ca   :  { %v271_v41 = vpop.f32.mrf.mxu1 }
 0x1cb   :  { %v272_v42 = vadd.f32 %v530_v37, %v271_v41 }
 0x1cc   :  { %v614_v43 = vpop.f32.mrf.mxu1 }
 0x1cd   :  { %v276_v45 = vmax.f32 %v272_v42, 0.0 }
 0x1cf   :  { %v277_v46 = vpack.c.bf16 %v276_v45, %v275_v44 }
 0x1d1   :  { %632 = vmatmul.mubr.bf16.vlgmr.msra.gmra.mxu0 %v277_v46 }
 0x291   :  { %v383_v51 = vpop.f32.mrf.mxu0 }
 0x292   :  { %v384_v53 = vadd.f32 %v539_v50, %v383_v51 }
 0x293   :  { %v633_v52 = vpop.f32.mrf.mxu0 }
 0x294   :  { %v390_v57 = vmax.f32 %v384_v53, 0.0 }
 0x295   :  { %v386_v54 = vpop.f32.mrf.mxu0 }
 0x296   :  { %v387_v55 = vadd.f32 %v539_v50, %v386_v54 }
 0x297   :  { %v634_v56 = vpop.f32.mrf.mxu0 }
 0x298   :  { %v391_v58 = vmax.f32 %v387_v55, 0.0 }
 0x29a   :  { %v392_v59 = vpack.c.bf16 %v391_v58, %v390_v57 }
 0x29c   :  { %652 = vmatmul.mubr.bf16.vlgmr.msra.gmra.mxu1 %v392_v59 }
 0x35c   :  { %v498_v61 = vpop.f32.mrf.mxu1 }
 0x35d   :  { %v499_v62 = vadd.f32 %v548_v60, %v498_v61 }
 0x35e   :  { %v653_v63 = vpop.f32.mrf.mxu1 }
 0x35f   :  { %505 = vst [vmem:[#allocation10] sm:$0xff] %v499_v62 }
 0x360   :  { %v501_v0 = vpop.f32.mrf.mxu1 }
 0x361   :  { %v502_v1 = vadd.f32 %v548_v60, %v501_v0 }
 0x362   :  { %v654_v2 = vpop.f32.mrf.mxu1 }
 0x363   :  { %506 = vst [vmem:[#allocation10 + $0x8] sm:$0xff] %v502_v1 }
 0x364   :  { %511 = vsyncadd [#allocation4], 224  ;;  %s808_s6 = smov [#allocation10]  }
 0x365   :  { %s512_s15 = sshll.u32 %s808_s6, 4  ;;  %s513_s15 = int_to_ptr.vmem [resolvable:$true] %s512_s15 }
 0x366   :  { %s772_s16 = scalar_lea.vmem %s513_s15, 32  ;;  %s776_s17 = scalar_lea.vmem %s513_s15, 256 }
 0x367   :  { %p773_p6 = scmp.ne.s32.totalorder %s513_s15, %s772_s16  ;;  %p777_p7 = scmp.lt.s32.totalorder %s513_s15, %s513_s15 }
 0x368   :  { %p778_p8 = scmp.lt.s32.totalorder %s776_s17, %s772_s16 }
 0x36a   :  { %p779_p9 = por %p778_p8, %p777_p7 }
 0x36c   :  { %p780_p10 = pnand %p779_p9, %p773_p6 }
 0x36e   :  { %783 = shalt.err (!%p780_p10)
}
 0x36f   :  { %s809_s8 = smov 32   ;;  %s810_s18 = smov 2  }
 0x370   :  { %518 = dma.vmem_to_hbm [thread:$0]  %s513_s15, 32, %s949_s9, [#allocation4], %s809_s8, %s809_s8, %s810_s18  }
 0x371   :  { %798 = dma.done.wait [#allocation4], 256  }
 0x372   :  { %799 = vsyncadd [#allocation4], 4294967040 }
 0x373   :  { %522 = vsyncpa [#allocation3], 1 }
 0x374   :  { %523 = vsyncpa [#allocation6], 1 }
 0x375   :  { %524 = vsyncpa [#allocation9], 1 }
 0x376   :  { %525 = vsyncpa [#allocation4], 1 }

</bundles_post_ra>
